<compile_context>
chip_gen: v7x
topology: tpu7x:2x2x1
jax: 0.10.0
libtpu: 0.0.40
codegen_flags: <defaults>
</compile_context>

<pallas_src>
import functools

import jax
import jax.numpy as jnp
from jax import lax
from jax.experimental import pallas as pl
from jax.experimental.pallas import tpu as pltpu

LANES = 128
SUBLANES = 8
CHUNK_ROWS = 128          # inner accumulation chunk: (128,128) f32 = 64 KiB
MAX_TILE_ROWS = 4096      # (4096,128) f32 = 2 MiB/block; 2 inputs x 2 bufs = 8 MiB
NUM_SHARDS = 2            # leading "parallel" grid axis (split across TCs on v7x)


def _round_up(a, m):
    return ((a + m - 1) // m) * m


def _dice_partial_kernel(x_ref, t_ref, o_ref, *, tile_rows, rows,
                         total_steps, steps_per_shard, masked):
    c = pl.program_id(0)                  # shard ("parallel")
    i = pl.program_id(1)                  # step within shard ("arbitrary")
    g = c * steps_per_shard + i           # global row-block index

    @pl.when(i == 0)
    def _():
        o_ref[...] = jnp.zeros_like(o_ref)

    def accum(use_mask):
        row_base = g * tile_rows

        def partials(xv, tv, r0):
            # sigmoid(x) = 0.5*(tanh(x/2)+1): keeps the transcendental on the
            # EUP slot and avoids the exact-divide path of jax.nn.sigmoid.
            p = 0.5 * (jnp.tanh(0.5 * xv.astype(jnp.float32)) + 1.0)
            tf = tv.astype(jnp.float32)
            if use_mask:
                r = lax.broadcasted_iota(jnp.int32, p.shape, 0)
                valid = (row_base + r0 + r) < rows   # row-level bound (no overflow)
                p = jnp.where(valid, p, 0.0)
                tf = jnp.where(valid, tf, 0.0)

            def fold(v):                  # (R,128) -> (8,128): pure VPU vreg adds
                return v.reshape(-1, SUBLANES, LANES).sum(axis=0)

            return fold(p * tf), fold(p), fold(tf)

        if tile_rows % CHUNK_ROWS == 0 and tile_rows > CHUNK_ROWS:
            # Walk the block in 128-row chunks with vreg-resident carries so the
            # compiler never stages multi-MiB p / t / p*t intermediates in VMEM.
            n_chunks = tile_rows // CHUNK_ROWS
            zero = jnp.zeros((SUBLANES, LANES), jnp.float32)

            def body(j, carry):
                r0 = pl.multiple_of(j * CHUNK_ROWS, CHUNK_ROWS)
                xv = x_ref[pl.ds(r0, CHUNK_ROWS), :]
                tv = t_ref[pl.ds(r0, CHUNK_ROWS), :]
                di, dp, dt = partials(xv, tv, r0)
                ai, ap, at = carry
                return (ai + di, ap + dp, at + dt)

            ai, ap, at = lax.fori_loop(0, n_chunks, body, (zero, zero, zero),
                                       unroll=True)
        else:
            ai, ap, at = partials(x_ref[...], t_ref[...], 0)

        o_ref[0] += ai    # sum(sigmoid(x) * t) partials
        o_ref[1] += ap    # sum(sigmoid(x))     partials
        o_ref[2] += at    # sum(t)              partials

    if masked:
        # Only the globally-last block can be partial: steady-state steps pay
        # no iota/compare/select work.
        @pl.when(g == total_steps - 1)
        def _():
            accum(True)

        @pl.when(g < total_steps - 1)
        def _():
            accum(False)
    elif NUM_SHARDS * steps_per_shard != total_steps:
        @pl.when(g < total_steps)
        def _():
            accum(False)
    else:
        accum(False)


def dice_loss(inputs, targets, smooth=1e-07):
    """inputs, targets: [B, 1, H, W] (any float/int/bool dtype). Returns scalar f32."""
    n = int(inputs.size)
    x = inputs.reshape(-1)
    t = targets.reshape(-1)

    # 128-aligned prefix goes through the kernel (zero-copy reshape when the
    # size is already lane-aligned); the <128-element tail and tiny inputs are
    # folded in with a negligible jnp reduction. No whole-array pad/copy.
    n_main = (n // LANES) * LANES
    rows = n_main // LANES

    item = min(inputs.dtype.itemsize, targets.dtype.itemsize)
    row_align = SUBLANES * max(1, 4 // item)   # 8 f32 / 16 bf16 / 32 int8-bool

    inter = jnp.float32(0.0)
    p_sum = jnp.float32(0.0)
    t_sum = jnp.float32(0.0)

    use_kernel = rows >= 2 * row_align
    if use_kernel:
        if n_main != n:
            x_main = x[:n_main]
            t_main = t[:n_main]
        else:
            x_main, t_main = x, t
        x2 = x_main.reshape(rows, LANES)
        t2 = t_main.reshape(rows, LANES)

        tile_rows = min(MAX_TILE_ROWS,
                        _round_up(pl.cdiv(rows, NUM_SHARDS), row_align))
        total_steps = pl.cdiv(rows, tile_rows)
        steps_per_shard = pl.cdiv(total_steps, NUM_SHARDS)
        masked = (rows % tile_rows) != 0

        def in_map(c, i):
            g = c * steps_per_shard + i
            return (jnp.minimum(g, total_steps - 1), 0)

        kernel = functools.partial(
            _dice_partial_kernel,
            tile_rows=tile_rows, rows=rows, total_steps=total_steps,
            steps_per_shard=steps_per_shard, masked=masked)

        partial_sums = pl.pallas_call(
            kernel,
            out_shape=jax.ShapeDtypeStruct((NUM_SHARDS * 3, SUBLANES, LANES),
                                           jnp.float32),
            grid_spec=pltpu.PrefetchScalarGridSpec(
                num_scalar_prefetch=0,
                grid=(NUM_SHARDS, steps_per_shard),
                in_specs=[
                    pl.BlockSpec((tile_rows, LANES), in_map),
                    pl.BlockSpec((tile_rows, LANES), in_map),
                ],
                out_specs=pl.BlockSpec((3, SUBLANES, LANES),
                                       lambda c, i: (c, 0, 0)),
            ),
            compiler_params=pltpu.CompilerParams(
                dimension_semantics=("parallel", "arbitrary")),
        )(x2, t2)

        sums = jnp.sum(partial_sums.reshape(NUM_SHARDS, 3, SUBLANES, LANES),
                       axis=(0, 2, 3))
        inter, p_sum, t_sum = sums[0], sums[1], sums[2]
        tail_start = n_main
    else:
        tail_start = 0

    if tail_start < n:   # <128-element tail (or tiny-input fallback)
        xt = x[tail_start:].astype(jnp.float32)
        tt = t[tail_start:].astype(jnp.float32)
        pt = jax.nn.sigmoid(xt)
        inter = inter + jnp.sum(pt * tt)
        p_sum = p_sum + jnp.sum(pt)
        t_sum = t_sum + jnp.sum(tt)

    smooth = jnp.float32(smooth)
    dice = (2.0 * inter + smooth) / (p_sum + t_sum + smooth)
    return 1.0 - dice


def _dice_loss_ref(inputs, targets, smooth=1e-07):
    p = jax.nn.sigmoid(inputs.astype(jnp.float32)).reshape(-1)
    t = targets.astype(jnp.float32).reshape(-1)
    inter = jnp.sum(p * t)
    dice = (2.0 * inter + smooth) / (jnp.sum(p) + jnp.sum(t) + smooth)
    return 1.0 - dice


if __name__ == "__main__":
    key = jax.random.PRNGKey(0)

    shapes = [
        (2, 1, 32, 32),     # lane+sublane aligned, one block per shard, no mask
        (2, 1, 30, 47),     # unaligned: masked last block + <128-element tail
        (2, 1, 128, 256),   # large enough to exercise the chunked inner loop
    ]
    for idx, shape in enumerate(shapes):
        k1, k2 = jax.random.split(jax.random.fold_in(key, idx))
        logits = jax.random.normal(k1, shape, dtype=jnp.float32)
        masks = (jax.random.uniform(k2, shape) > 0.5).astype(jnp.float32)

        loss = jax.block_until_ready(dice_loss(logits, masks))
        ref = _dice_loss_ref(logits, masks)
        assert jnp.allclose(loss, ref, atol=2e-5, rtol=2e-5), (shape, loss, ref)

    print("KERNEL_OK")
</pallas_src>

<mosaic_0001>
module attributes {stable_mosaic.version = 11 : i64} {
  func.func @_dice_partial_kernel(%arg0: i32, %arg1: i32, %arg2: memref<8x128xf32, #tpu.memory_space<vmem>>, %arg3: memref<8x128xf32, #tpu.memory_space<vmem>>, %arg4: memref<3x8x128xf32, #tpu.memory_space<vmem>>) attributes {dimension_semantics = [#tpu.dimension_semantics<parallel>, #tpu.dimension_semantics<arbitrary>], iteration_bounds = array<i64: 2, 1>, scalar_prefetch = 0 : i64, scratch_operands = 0 : i64, tpu.core_type = #tpu.core_type<tc>, window_params = [{transform_indices = @transform_0, window_bounds = array<i64: 8, 128>}, {transform_indices = @transform_1, window_bounds = array<i64: 8, 128>}, {transform_indices = @transform_2, window_bounds = array<i64: 3, 8, 128>}]} {
    %c0_i32 = arith.constant 0 : i32
    %0 = arith.cmpi eq, %arg1, %c0_i32 : i32
    %1 = arith.extui %0 : i1 to i32
    %c0_i32_0 = arith.constant 0 : i32
    %2 = arith.cmpi ne, %1, %c0_i32_0 : i32
    scf.if %2 {
      %cst_25 = arith.constant 0.000000e+00 : f32
      %37 = vector.broadcast %cst_25 : f32 to vector<3x8x128xf32>
      %c0_26 = arith.constant 0 : index
      %c0_27 = arith.constant 0 : index
      %c0_28 = arith.constant 0 : index
      %38 = vector.load %arg4[%c0_26, %c0_27, %c0_28] : memref<3x8x128xf32, #tpu.memory_space<vmem>>, vector<3x8x128xf32>
      tpu.vector_store %arg4[%c0_26, %c0_27, %c0_28], %37 {strides = array<i32>} : memref<3x8x128xf32, #tpu.memory_space<vmem>>, vector<3x8x128xf32>,
    } else {
    }
    %c0 = arith.constant 0 : index
    %c0_1 = arith.constant 0 : index
    %3 = vector.load %arg2[%c0, %c0_1] : memref<8x128xf32, #tpu.memory_space<vmem>>, vector<8x128xf32>
    %c0_2 = arith.constant 0 : index
    %c0_3 = arith.constant 0 : index
    %4 = vector.load %arg3[%c0_2, %c0_3] : memref<8x128xf32, #tpu.memory_space<vmem>>, vector<8x128xf32>
    %cst = arith.constant 5.000000e-01 : f32
    %5 = vector.broadcast %cst : f32 to vector<8x128xf32>
    %6 = arith.mulf %5, %3 : vector<8x128xf32>
    %7 = math.tanh %6 : vector<8x128xf32>
    %cst_4 = arith.constant 1.000000e+00 : f32
    %8 = vector.broadcast %cst_4 : f32 to vector<8x128xf32>
    %9 = arith.addf %7, %8 : vector<8x128xf32>
    %cst_5 = arith.constant 5.000000e-01 : f32
    %10 = vector.broadcast %cst_5 : f32 to vector<8x128xf32>
    %11 = arith.mulf %10, %9 : vector<8x128xf32>
    %12 = arith.mulf %11, %4 : vector<8x128xf32>
    %13 = vector.shape_cast %12 : vector<8x128xf32> to vector<1x8x128xf32>
    %cst_6 = arith.constant dense<0.000000e+00> : vector<8x128xf32>
    %14 = vector.multi_reduction <add>, %13, %cst_6 [0] : vector<1x8x128xf32> to vector<8x128xf32>
    %15 = vector.shape_cast %11 : vector<8x128xf32> to vector<1x8x128xf32>
    %cst_7 = arith.constant dense<0.000000e+00> : vector<8x128xf32>
    %16 = vector.multi_reduction <add>, %15, %cst_7 [0] : vector<1x8x128xf32> to vector<8x128xf32>
    %17 = vector.shape_cast %4 : vector<8x128xf32> to vector<1x8x128xf32>
    %cst_8 = arith.constant dense<0.000000e+00> : vector<8x128xf32>
    %18 = vector.multi_reduction <add>, %17, %cst_8 [0] : vector<1x8x128xf32> to vector<8x128xf32>
    %c0_9 = arith.constant 0 : index
    %c0_10 = arith.constant 0 : index
    %c0_11 = arith.constant 0 : index
    %19 = vector.load %arg4[%c0_9, %c0_10, %c0_11] : memref<3x8x128xf32, #tpu.memory_space<vmem>>, vector<1x8x128xf32>
    %20 = vector.shape_cast %19 : vector<1x8x128xf32> to vector<8x128xf32>
    %21 = arith.addf %20, %14 : vector<8x128xf32>
    %c0_12 = arith.constant 0 : index
    %c0_13 = arith.constant 0 : index
    %c0_14 = arith.constant 0 : index
    %22 = vector.load %arg4[%c0_12, %c0_13, %c0_14] : memref<3x8x128xf32, #tpu.memory_space<vmem>>, vector<1x8x128xf32>
    %23 = vector.shape_cast %22 : vector<1x8x128xf32> to vector<8x128xf32>
    %24 = vector.shape_cast %21 : vector<8x128xf32> to vector<1x8x128xf32>
    tpu.vector_store %arg4[%c0_12, %c0_13, %c0_14], %24 {strides = array<i32>} : memref<3x8x128xf32, #tpu.memory_space<vmem>>, vector<1x8x128xf32>,
    %c1 = arith.constant 1 : index
    %c0_15 = arith.constant 0 : index
    %c0_16 = arith.constant 0 : index
    %25 = vector.load %arg4[%c1, %c0_15, %c0_16] : memref<3x8x128xf32, #tpu.memory_space<vmem>>, vector<1x8x128xf32>
    %26 = vector.shape_cast %25 : vector<1x8x128xf32> to vector<8x128xf32>
    %27 = arith.addf %26, %16 : vector<8x128xf32>
    %c1_17 = arith.constant 1 : index
    %c0_18 = arith.constant 0 : index
    %c0_19 = arith.constant 0 : index
    %28 = vector.load %arg4[%c1_17, %c0_18, %c0_19] : memref<3x8x128xf32, #tpu.memory_space<vmem>>, vector<1x8x128xf32>
    %29 = vector.shape_cast %28 : vector<1x8x128xf32> to vector<8x128xf32>
    %30 = vector.shape_cast %27 : vector<8x128xf32> to vector<1x8x128xf32>
    tpu.vector_store %arg4[%c1_17, %c0_18, %c0_19], %30 {strides = array<i32>} : memref<3x8x128xf32, #tpu.memory_space<vmem>>, vector<1x8x128xf32>,
    %c2 = arith.constant 2 : index
    %c0_20 = arith.constant 0 : index
    %c0_21 = arith.constant 0 : index
    %31 = vector.load %arg4[%c2, %c0_20, %c0_21] : memref<3x8x128xf32, #tpu.memory_space<vmem>>, vector<1x8x128xf32>
    %32 = vector.shape_cast %31 : vector<1x8x128xf32> to vector<8x128xf32>
    %33 = arith.addf %32, %18 : vector<8x128xf32>
    %c2_22 = arith.constant 2 : index
    %c0_23 = arith.constant 0 : index
    %c0_24 = arith.constant 0 : index
    %34 = vector.load %arg4[%c2_22, %c0_23, %c0_24] : memref<3x8x128xf32, #tpu.memory_space<vmem>>, vector<1x8x128xf32>
    %35 = vector.shape_cast %34 : vector<1x8x128xf32> to vector<8x128xf32>
    %36 = vector.shape_cast %33 : vector<8x128xf32> to vector<1x8x128xf32>
    tpu.vector_store %arg4[%c2_22, %c0_23, %c0_24], %36 {strides = array<i32>} : memref<3x8x128xf32, #tpu.memory_space<vmem>>, vector<1x8x128xf32>,
    return
  }
  func.func @transform_0(%arg0: i32, %arg1: i32) -> (i32, i32) {
    %c1_i32 = arith.constant 1 : i32
    %0 = arith.muli %arg0, %c1_i32 : i32
    %1 = arith.addi %0, %arg1 : i32
    %c1_i32_0 = arith.constant 1 : i32
    %2 = arith.minsi %1, %c1_i32_0 : i32
    %c0_i32 = arith.constant 0 : i32
    %c0_i32_1 = arith.constant 0 : i32
    return %2, %c0_i32 : i32, i32
  }
  func.func @transform_1(%arg0: i32, %arg1: i32) -> (i32, i32) {
    %c1_i32 = arith.constant 1 : i32
    %0 = arith.muli %arg0, %c1_i32 : i32
    %1 = arith.addi %0, %arg1 : i32
    %c1_i32_0 = arith.constant 1 : i32
    %2 = arith.minsi %1, %c1_i32_0 : i32
    %c0_i32 = arith.constant 0 : i32
    %c0_i32_1 = arith.constant 0 : i32
    return %2, %c0_i32 : i32, i32
  }
  func.func @transform_2(%arg0: i32, %arg1: i32) -> (i32, i32, i32) {
    %c0_i32 = arith.constant 0 : i32
    %c0_i32_0 = arith.constant 0 : i32
    %c0_i32_1 = arith.constant 0 : i32
    return %arg0, %c0_i32, %c0_i32_0 : i32, i32, i32
  }
}

</mosaic_0001>

<bundles_post_ra>
// kernel: tpu_custom_call.1
= control target key start
LH: loop header
LB: loop body
LE: loop exit
PB: predicated region body
PF: predicated region fallthrough
CT: control target
= control target key end

     0   :  { %7 = vsyncpa [#allocation3], 0  ;;  %s941_s0 = inlined_call_operand.hbm [shape: f32[16,128], index: 0, kind: input, shape index: {}]   ;;  %s942_s1 = inlined_call_operand.hbm [shape: f32[16,128], index: 1, kind: input, shape index: {}]   ;;  %s943_s2 = inlined_call_operand.hbm [shape: f32[6,8,128], index: 2, kind: output, shape index: {}]  }
   0x1   :  { %9 = vsyncpa [#allocation3 + $0x1], 0 }
   0x2   :  { %10 = vsyncpa [#allocation6], 0 }
   0x3   :  { %12 = vsyncpa [#allocation6 + $0x1], 0 }
   0x4   :  { %13 = vsyncpa [#allocation4], 0 }
   0x5   :  { %15 = vsyncpa [#allocation4 + $0x1], 0  ;;  %s687_s9 = smov 0   ;;  %s689_s10 = smov 0  }
   0x6   :  { %s691_s11 = smov 0   ;;  %s693_s12 = smov 0  }
   0x7   :  { %s695_s13 = smov 0   ;;  %s697_s14 = smov 0  }
   0x8   :  { %s699_s15 = smov 0   ;;  %s701_s16 = smov 0  }
   0x9   :  { %s703_s17 = smov 0  }
   0xa LB: > { %s379_s18 = sadd.s32 4294967295, %s665_s17   ;;  %s380_s19 = sadd.s32 4294967294, %s665_s17   ;;  %s665_s17 = sphi %s703_s17, %s21_s17   ;;  %s661_s16 = sphi %s701_s16, %s968_s16   ;;  %s657_s15 = sphi %s699_s15, %s967_s15   ;;  %s653_s14 = sphi %s697_s14, %s966_s14   ;;  %s649_s13 = sphi %s695_s13, %s965_s13   ;;  %s645_s12 = sphi %s693_s12, %s964_s12   ;;  %s641_s11 = sphi %s691_s11, %s963_s11   ;;  %s637_s10 = sphi %s689_s10, %s962_s10   ;;  %s633_s9 = sphi %s687_s9, %s961_s9  }
   0xb   : > { %s33_s20 = sadd.s32 1, %s661_s16  ;;  %p38_p0 = scmp.lt.s32.totalorder %s661_s16, 1 }
   0xc   : > { %p35_p1 = scmp.ge.s32.totalorder %s33_s20, 2  ;;  %s46_s21 = sadd.s32 1, %s653_s14 }
   0xd   : > { %s736_s22 = scalar_select %p38_p0, %s661_s16, 1 }
   0xe   : > { %s970_s20 = smov (%p35_p1, %s33_s20), 0  ;;  %p53_p2 = scmp.ne.s32.totalorder %s653_s14, %s649_s13 }
   0xf   : > { %p54_p3 = scmp.eq.s32.totalorder %s665_s17, 0  ;;  %p41_p4 = scmp.lt.s32.totalorder %s970_s20, 1 }
  0x10   : > { %p59_p5 = scmp.ne.s32.totalorder %s649_s13, %s645_s12  ;;  %p60_p7 = scmp.eq.s32.totalorder %s379_s18, 0 }
  0x11   : > { %p745_p6 = por %p54_p3, %p53_p2  ;;  %s101_s26 = ssub.s32 %s661_s16, %s970_s20 }
  0x12   : > { %s42_s24 = scalar_select %p41_p4, %s970_s20, 1 }
  0x13   : > { %p750_p8 = por %p60_p7, %p59_p5  ;;  %p102_p9 = scmp.eq.s32.totalorder %s101_s26, 0 }
  0x14   : > { %s43_s27 = ssub.s32 %s736_s22, %s42_s24  ;;  %s104_s28 = sadd.s32 1, %s641_s11 }
  0x15   : > { %s948_s25 = scalar_select %p750_p8, 1, 0 }
  0x16   : > { %p44_p10 = scmp.eq.s32.totalorder %s43_s27, 0  ;;  %p114_p11 = scmp.ne.s32.totalorder %s641_s11, %s637_s10 }
  0x17   : > { %s759_s29 = scalar_select %p102_p9, %s641_s11, %s104_s28  }
  0x18   : > { %s762_s30 = scalar_select %p44_p10, %s653_s14, %s46_s21  }
  0x19   : > { %p115_p12 = scmp.eq.s32.totalorder %s379_s18, 1  ;;  %p120_p13 = scmp.ne.s32.totalorder %s637_s10, %s633_s9 }
  0x1a   : > { %p121_p0 = scmp.eq.s32.totalorder %s380_s19, 1  ;;  %p416_p4 = scmp.lt.s32.totalorder %s665_s17, 2 }
  0x1b   : > { %p768_p1 = por %p115_p12, %p114_p11  ;;  %s779_s5 = sand.u32 1, %s653_s14  }
  0x1c   : > { %p773_p3 = por %p121_p0, %p120_p13  ;;  %s384_s6 = sshll.u32 %s736_s22, 7 }
  0x1d   : > { %s949_s3 = scalar_select %p768_p1, 1, 0 }
  0x1e   : > { %s950_s4 = scalar_select %p773_p3, 1, 0 }
  0x1f   : > { %s944_s7 = sshll.u32 %s779_s5, 3  ;;  %s788_s18 = scalar_lea.hbm %s941_s0, %s384_s6 }
  0x20   : > { %s145_s19 = scalar_lea.vmem [#allocation2], %s944_s7  ;;  %p794_p5 = pnand %p416_p4, %p745_p6 }
  0x21   : > { %s155_s21 = sshll.u32 %s145_s19, 4  ;;  %s142_s26 = scalar_lea.sflag [#allocation3], %s779_s5  ;;  %s798_s21 = int_to_ptr.vmem [resolvable:$true] %s155_s21 }
  0x22   : > { %s495_s27 = scalar_lea.hbm %s788_s18, 128  ;;  %p497_p11 = pneg %p794_p5 }
  0x23   : > { %p496_p10 = scmp.ne.s32.totalorder %s788_s18, %s495_s27  ;;  %s500_s8 = scalar_lea.hbm %s941_s0, 256 }
  0x24   : > { %p501_p6 = scmp.lt.u32.totalorder %s788_s18, %s941_s0  ;;  %p502_p0 = scmp.lt.u32.totalorder %s500_s8, %s495_s27 }
  0x25   : > { %p498_p12 = pnand %p497_p11, %p496_p10  ;;  %p504_p2 = scmp.lt.u32.totalorder %s495_s27, %s788_s18 }
  0x26   : > { %p503_p4 = por %p502_p0, %p501_p6 }
  0x27   : > { %p499_p13 = pneg %p498_p12 }
  0x28   : > { %p505_p7 = por %p504_p2, %p503_p4 }
  0x2a   : > { %p506_p9 = pnand %p505_p7, %p499_p13 }
  0x2c   : > { %509 = shalt.err (!%p506_p9)
}
  0x2d   : > { %s510_s7 = scalar_lea.vmem %s798_s21, 128  ;;  %s667_s23 = smov [#allocation2]  }
  0x2e   : > { %p511_p10 = scmp.ne.s32.totalorder %s798_s21, %s510_s7  ;;  %s515_s28 = sshll.u32 %s667_s23, 4  ;;  %s516_s28 = int_to_ptr.vmem [resolvable:$false] %s515_s28 }
  0x2f   : > { %s517_s12 = scalar_lea.vmem %s516_s28, 256  ;;  %p518_p1 = scmp.lt.s32.totalorder %s798_s21, %s516_s28 }
  0x30   : > { %p513_p12 = pnand %p511_p10, %p497_p11  ;;  %p519_p6 = scmp.lt.s32.totalorder %s517_s12, %s510_s7 }
  0x32   : > { %p514_p3 = pneg %p513_p12  ;;  %p520_p0 = por %p519_p6, %p518_p1 }
  0x34   : > { %p521_p2 = pnand %p520_p0, %p514_p3 }
  0x36   : > { %524 = shalt.err (!%p521_p2)
}
  0x37   : > { %408 = dma.hbm_to_vmem [thread:$0]  (!%p794_p5), %s788_s18, 128, %s798_s21, %s142_s26  }
  0x38   : > { %p952_p7 = scmp.lt.s32.totalorder %s665_s17, 3  ;;  %p953_p9 = scmp.ge.s32.totalorder %s665_s17, 1 }
  0x39   : > { %s841_s19 = scalar_lea.hbm %s942_s1, %s384_s6  ;;  %s955_s23 = sshll.u32 %s779_s5, 3 }
  0x3a   : > { %p832_p13 = pnand %p953_p9, %p952_p7  ;;  %s166_s28 = scalar_lea.vmem [#allocation5], %s955_s23 }
  0x3b   : > { %s176_s12 = sshll.u32 %s166_s28, 4  ;;  %s163_s18 = scalar_lea.sflag [#allocation6], %s779_s5  ;;  %s177_s12 = int_to_ptr.vmem [resolvable:$true] %s176_s12 }
  0x3c   : > { %s954_s27 = scalar_select %p832_p13, 1, 0 }
  0x3d   : > { %s525_s21 = scalar_lea.hbm %s841_s19, 128  ;;  %s530_s6 = scalar_lea.hbm %s942_s1, 256 }
  0x3e   : > { %p526_p1 = scmp.ne.s32.totalorder %s841_s19, %s525_s21  ;;  %p531_p10 = scmp.lt.u32.totalorder %s841_s19, %s942_s1 }
  0x3f   : > { %p532_p12 = scmp.lt.u32.totalorder %s530_s6, %s525_s21  ;;  %p534_p0 = scmp.lt.u32.totalorder %s525_s21, %s841_s19 }
  0x40   : > { %p528_p3 = pnand %p526_p1, %p497_p11 }
  0x41   : > { %p533_p6 = por %p532_p12, %p531_p10 }
  0x42   : > { %p529_p4 = pneg %p528_p3 }
  0x43   : > { %p535_p2 = por %p534_p0, %p533_p6 }
  0x45   : > { %p536_p7 = pnand %p535_p2, %p529_p4 }
  0x47   : > { %539 = shalt.err (!%p536_p7)
}
  0x48   : > { %s540_s5 = scalar_lea.vmem %s177_s12, 128  ;;  %s668_s23 = smov [#allocation5]  }
  0x49   : > { %p541_p9 = scmp.ne.s32.totalorder %s177_s12, %s540_s5  ;;  %s545_s28 = sshll.u32 %s668_s23, 4  ;;  %s546_s28 = int_to_ptr.vmem [resolvable:$false] %s545_s28 }
  0x4a   : > { %s547_s22 = scalar_lea.vmem %s546_s28, 256  ;;  %p548_p8 = scmp.lt.s32.totalorder %s177_s12, %s546_s28 }
  0x4b   : > { %p543_p1 = pnand %p541_p9, %p497_p11  ;;  %p549_p13 = scmp.lt.s32.totalorder %s547_s22, %s540_s5 }
  0x4d   : > { %p544_p3 = pneg %p543_p1  ;;  %p550_p10 = por %p549_p13, %p548_p8 }
  0x4f   : > { %p551_p12 = pnand %p550_p10, %p544_p3 }
  0x51   : > { %554 = shalt.err (!%p551_p12)
}
  0x52   : > { %411 = dma.hbm_to_vmem [thread:$0]  (!%p794_p5), %s841_s19, 128, %s177_s12, %s163_s18  }
  0x53   : > { %p956_p4 = scmp.ne.s32.totalorder %s954_s27, 0 }
  0x54   : > { %s187_s21 = sand.u32 (!%p956_p4), 1, %s649_s13   ;;  %p957_p11 = scmp.ne.s32.totalorder (!%p956_p4), %s948_s25, 0 }
  0x55   : > { %185 = sbr.rel (%p956_p4) target bundleno = 130 (0x82), region = 28  ;;  %s388_s26 = sshll.u32 (!%p956_p4), %s187_s21, 3 }
  0x56   : > { %s188_s6 = scalar_lea.sflag (!%p956_p4), [#allocation3], %s187_s21  ;;  %s191_s7 = scalar_lea.vmem (!%p956_p4), [#allocation2], %s388_s26 }
  0x5c   : > { %620 = dma.done.wait (%p957_p11), %s188_s6, 128  }
  0x5d   : > { %622 = vsyncadd (%p957_p11), %s188_s6, 4294967168  ;;  %s197_s8 = scalar_lea.sflag [#allocation6], %s187_s21  ;;  %s200_s5 = scalar_lea.vmem [#allocation5], %s388_s26 }
  0x5e   : > { %624 = dma.done.wait (%p957_p11), %s197_s8, 128  }
  0x5f   : > { %626 = vsyncadd (%p957_p11), %s197_s8, 4294967168  ;;  %s223_s24 = sand.u32 1, %s637_s10   ;;  %v240_v0 = vld [vmem:[%s191_s7] sm:$0xff]  ;;  %v241_v1 = vld [vmem:[%s200_s5] sm:$0xff]  ;;  %s397_s12 = smul.u32 384, %s657_s15 }
  0x60   : > { %s398_s27 = smul.u32 24, %s223_s24  ;;  %v242_v2 = vmul.f32 0.5, %v240_v0  ;;  %s885_s22 = scalar_lea.sflag [#allocation4], %s223_s24 }
  0x61   : > { %s881_s28 = scalar_lea.hbm %s943_s2, %s397_s12  ;;  %p958_p5 = scmp.ne.s32.totalorder %s949_s3, 0 }
  0x62   : > { %493 = vtanh.f32 %v242_v2  ;;  %s225_s19 = scalar_lea.vmem [#allocation7], %s398_s27  ;;  %s669_s15 = smov [#allocation7]  }
  0x63   : > { %393 = vst [vmem:[%s225_s19 + $0x10] sm:$0xff] %v241_v1  ;;  %s275_s18 = sshll.u32 %s225_s19, 4  ;;  %s559_s26 = sshll.u32 %s669_s15, 4  ;;  %s883_s18 = int_to_ptr.vmem [resolvable:$true] %s275_s18  ;;  %s560_s26 = int_to_ptr.vmem [resolvable:$false] %s559_s26 }
  0x64   : > { %s555_s21 = scalar_lea.vmem %s883_s18, 384  ;;  %s561_s6 = scalar_lea.vmem %s560_s26, 768 }
  0x65   : > { %p556_p8 = scmp.ne.s32.totalorder %s883_s18, %s555_s21  ;;  %p562_p0 = scmp.lt.s32.totalorder %s883_s18, %s560_s26 }
  0x66   : > { %p563_p2 = scmp.lt.s32.totalorder %s561_s6, %s555_s21 }
  0x67   : > { %p557_p13 = pnand %p556_p8, %p958_p5 }
  0x68   : > { %p564_p7 = por %p563_p2, %p562_p0 }
  0x69   : > { %p558_p6 = pneg %p557_p13 }
  0x6b   : > { %p565_p9 = pnand %p564_p7, %p558_p6 }
  0x6c   : > { %v494_v3 = vpop.eup %493 }
  0x6d   : > { %v244_v4 = vadd.f32 1.0, %v494_v3 }
  0x6f   : > { %v245_v5 = vmul.f32 0.5, %v244_v4 }
  0x71   : > { %v246_v6 = vmul.f32 %v245_v5, %v241_v1  ;;  %391 = vst [vmem:[%s225_s19 + $0x8] sm:$0xff] %v245_v5 }
  0x73   : > { %252 = vst [vmem:[%s225_s19] sm:$0xff] %v246_v6 }
  0x74   : > { %568 = shalt.err (!%p565_p9)
}
  0x75   : > { %s569_s7 = scalar_lea.hbm %s881_s28, 384  ;;  %s573_s24 = scalar_lea.hbm %s943_s2, 768 }
  0x76   : > { %p570_p1 = scmp.ne.s32.totalorder %s881_s28, %s569_s7  ;;  %p574_p12 = scmp.lt.u32.totalorder %s881_s28, %s943_s2 }
  0x77   : > { %p575_p4 = scmp.lt.u32.totalorder %s573_s24, %s569_s7  ;;  %p577_p8 = scmp.lt.u32.totalorder %s569_s7, %s881_s28 }
  0x78   : > { %p571_p3 = pnand %p570_p1, %p958_p5 }
  0x79   : > { %p576_p11 = por %p575_p4, %p574_p12 }
  0x7a   : > { %p572_p10 = pneg %p571_p3 }
  0x7b   : > { %p578_p13 = por %p577_p8, %p576_p11 }
  0x7d   : > { %p579_p6 = pnand %p578_p13, %p572_p10 }
  0x7f   : > { %582 = shalt.err (!%p579_p6)
}
  0x80   : > { %s670_s12 = smov 128   ;;  %s671_s23 = smov 8  }
  0x81   : > { %403 = dma.vmem_to_hbm [thread:$0]  (%p958_p5), %s883_s18, 384, %s881_s28, %s885_s22, %s670_s12, %s670_s12, %s671_s23  }
  0x82 PF: > { %s290_s25 = sand.u32 1, %s633_s9   ;;  %p959_p0 = scmp.ne.s32.totalorder %s950_s4, 0 }
  0x83   : > { %p960_p2 = scmp.ge.s32.totalorder %s665_s17, 2  ;;  %s291_s21 = scalar_lea.sflag [#allocation4], %s290_s25 }
  0x85   : > { %p413_p7 = pnand %p960_p2, %p959_p0 }
  0x87   : > { %628 = dma.done.wait (!%p413_p7), %s291_s21, 384  }
  0x88   : > { %630 = vsyncadd (!%p413_p7), %s291_s21, 4294966912  ;;  %s21_s17 = sadd.s32 1, %s665_s17   ;;  %s961_s9 = smov %s637_s10 }
  0x89   : > { %p18_p9 = scmp.ge.s32.totalorder %s21_s17, 4   ;;  %s962_s10 = smov %s641_s11 }
  0x8a   : > { %s963_s11 = smov %s759_s29  ;;  %s964_s12 = smov %s649_s13 }
  0x8b   : > { %s965_s13 = smov %s653_s14  ;;  %s966_s14 = smov %s762_s30 }
  0x8c   : > { %s967_s15 = smov %s661_s16  ;;  %s968_s16 = smov %s970_s20 }
  0x8d   :  { %20 = sbr.rel (!%p18_p9) target bundleno = 10 (0xa), region = 92 }
  0x94   :  { %296 = vsyncpa [#allocation3], 1 }
  0x95   :  { %298 = vsyncpa [#allocation3 + $0x1], 1 }
  0x96   :  { %299 = vsyncpa [#allocation6], 1 }
  0x97   :  { %301 = vsyncpa [#allocation6 + $0x1], 1 }
  0x98   :  { %302 = vsyncpa [#allocation4], 1 }
  0x99   :  { %304 = vsyncpa [#allocation4 + $0x1], 1 }

</bundles_post_ra>
